<compile_context>
chip_gen: v5e
topology: v5e:2x2
jax: 0.10.0
libtpu: 0.0.40
codegen_flags: <defaults>
</compile_context>

<pallas_src>
import jax
import jax.numpy as jnp
from jax import lax
from jax.experimental import pallas as pl
from jax.experimental.pallas import tpu as pltpu


def _round_up(x, m):
    return (x + m - 1) // m * m


# ----------------------------------------------------------------------------
# Pallas kernel: fc1 + relu + (BN-folded) fc2 on a batch tile
# ----------------------------------------------------------------------------
def _fasttext_mlp_kernel(pooled_ref, w1_ref, b1_ref, w2_ref, b2_ref, out_ref):
    # fc1 + bias + relu   (MXU matmul, f32 accumulation)
    h = jnp.dot(pooled_ref[...], w1_ref[...], preferred_element_type=jnp.float32)
    h = jnp.maximum(h + b1_ref[...], 0.0)
    # fc2 (BatchNorm eval-mode already folded into w2/b2 by the wrapper)
    out_ref[...] = (jnp.dot(h, w2_ref[...], preferred_element_type=jnp.float32)
                    + b2_ref[...]).astype(out_ref.dtype)


# ----------------------------------------------------------------------------
# Wrapper: fused gather + mean (glue), BN folding, padding, pallas_call
# ----------------------------------------------------------------------------
def fasttext_forward(x, s, params):
    del s  # sequence lengths are accepted but unused by Fasttext.forward

    B, _L = x.shape
    E = params["emb_word"].shape[1]
    H = params["w1"].shape[1]
    N = params["w2"].shape[1]
    F = 3 * E

    # --- glue: single gather over the concatenated table, then sequence mean ---
    emb_all = jnp.concatenate(
        [params["emb_word"], params["emb_ngram2"], params["emb_ngram3"]],
        axis=-1)                                        # (V, 3E)
    pooled = jnp.take(emb_all, x, axis=0).mean(axis=1)  # (B, 3E)
    # dropout(p=0.3): identity in inference mode

    # --- fold BatchNorm1d (eval) into fc2 ---
    eps = jnp.float32(1e-5)
    scale = params["gamma"] * lax.rsqrt(params["running_var"] + eps)   # (1, H)
    w2_eff = scale.reshape(H, 1) * params["w2"]                        # (H, N)
    b2_eff = params["b2"] + (
        (params["beta"] - params["running_mean"] * scale) @ params["w2"])  # (1, N)

    # --- pad to lane-dense / sublane-aligned shapes ---
    F_pad = _round_up(F, 128)
    H_pad = _round_up(H, 128)
    N_pad = _round_up(N, 128)

    # batch tiling: small batches -> single tile (rounded to sublane 8),
    # large batches -> 256-row tiles pipelined over a parallel grid.
    if B <= 256:
        TB = _round_up(B, 8)
    else:
        TB = 256
    B_pad = _round_up(B, TB)

    pooled_p = jnp.zeros((B_pad, F_pad), jnp.float32).at[:B, :F].set(pooled)
    w1_p = jnp.zeros((F_pad, H_pad), jnp.float32).at[:F, :H].set(params["w1"])
    b1_p = jnp.zeros((1, H_pad), jnp.float32).at[:, :H].set(params["b1"])
    w2_p = jnp.zeros((H_pad, N_pad), jnp.float32).at[:H, :N].set(w2_eff)
    b2_p = jnp.zeros((1, N_pad), jnp.float32).at[:, :N].set(b2_eff)

    grid = (B_pad // TB,)

    in_specs = [
        pl.BlockSpec((TB, F_pad), lambda i: (i, 0)),       # pooled: tiled over batch
        pl.BlockSpec((F_pad, H_pad), lambda i: (0, 0)),    # w1: resident
        pl.BlockSpec((1, H_pad), lambda i: (0, 0)),        # b1: resident
        pl.BlockSpec((H_pad, N_pad), lambda i: (0, 0)),    # w2 (BN-folded): resident
        pl.BlockSpec((1, N_pad), lambda i: (0, 0)),        # b2 (BN-folded): resident
    ]
    out_spec = pl.BlockSpec((TB, N_pad), lambda i: (i, 0))

    flops = 2 * B_pad * (F_pad * H_pad + H_pad * N_pad)
    bytes_accessed = 4 * (B_pad * F_pad + F_pad * H_pad + H_pad
                          + H_pad * N_pad + N_pad + B_pad * N_pad)

    out_p = pl.pallas_call(
        _fasttext_mlp_kernel,
        out_shape=jax.ShapeDtypeStruct((B_pad, N_pad), jnp.float32),
        grid=grid,
        in_specs=in_specs,
        out_specs=out_spec,
        compiler_params=pltpu.CompilerParams(
            dimension_semantics=("parallel",)),
        cost_estimate=pl.CostEstimate(flops=flops, transcendentals=0,
                                      bytes_accessed=bytes_accessed),
    )(pooled_p, w1_p, b1_p, w2_p, b2_p)

    # slice off batch padding and the zero-padded logit lanes
    return out_p[:B, :N]


# ----------------------------------------------------------------------------
# Pure-JAX reference (unfused, un-padded) for the sanity check
# ----------------------------------------------------------------------------
def fasttext_reference(x, s, params):
    del s
    ow = jnp.take(params["emb_word"], x, axis=0)
    ob = jnp.take(params["emb_ngram2"], x, axis=0)
    ot = jnp.take(params["emb_ngram3"], x, axis=0)
    out = jnp.concatenate([ow, ob, ot], axis=-1).mean(axis=1)
    out = out @ params["w1"] + params["b1"]
    out = jnp.maximum(out, 0.0)
    out = (out - params["running_mean"]) / jnp.sqrt(params["running_var"] + 1e-5) \
          * params["gamma"] + params["beta"]
    return out @ params["w2"] + params["b2"]


# ----------------------------------------------------------------------------
# Deterministic parameter construction (shapes follow the nn.Module __init__)
# ----------------------------------------------------------------------------
def make_params(key, vocab_size, embedding_dim, hidden_dim):
    ks = jax.random.split(key, 8)
    glove_weights = 0.1 * jax.random.normal(ks[0], (vocab_size, embedding_dim),
                                            jnp.float32)
    params = {
        # embeddings.weight and embedding_ngram2.weight are both copied from glove
        "emb_word": glove_weights,
        "emb_ngram2": glove_weights,
        # embedding_ngram3 keeps its default init
        "emb_ngram3": jax.random.normal(ks[1], (vocab_size, embedding_dim),
                                        jnp.float32),
        # fc1: Linear(3E, H)   (stored transposed: (3E, H))
        "w1": 0.1 * jax.random.normal(ks[2], (3 * embedding_dim, hidden_dim),
                                      jnp.float32),
        "b1": 0.1 * jax.random.normal(ks[3], (1, hidden_dim), jnp.float32),
        # BatchNorm1d(H) affine + running stats (deterministic, non-trivial)
        "gamma": 1.0 + 0.1 * jax.random.normal(ks[4], (1, hidden_dim), jnp.float32),
        "beta": 0.1 * jax.random.normal(ks[5], (1, hidden_dim), jnp.float32),
        "running_mean": jnp.zeros((1, hidden_dim), jnp.float32),
        "running_var": jnp.ones((1, hidden_dim), jnp.float32),
        # fc2: Linear(H, 2)
        "w2": 0.1 * jax.random.normal(ks[6], (hidden_dim, 2), jnp.float32),
        "b2": 0.1 * jax.random.normal(ks[7], (1, 2), jnp.float32),
    }
    return params


if __name__ == "__main__":
    VOCAB, EMB, HID = 50, 32, 32
    B, L = 4, 8

    key = jax.random.PRNGKey(0)
    k_param, k_x, k_s = jax.random.split(key, 3)

    params = make_params(k_param, VOCAB, EMB, HID)
    x = jax.random.randint(k_x, (B, L), 0, VOCAB, dtype=jnp.int32)
    s = jax.random.randint(k_s, (B,), 1, L + 1, dtype=jnp.int32)  # lengths (unused)

    fwd = jax.jit(fasttext_forward)
    out = jax.block_until_ready(fwd(x, s, params))

    ref = jax.block_until_ready(fasttext_reference(x, s, params))
    assert out.shape == (B, 2)
    assert jnp.allclose(out, ref, atol=1e-4, rtol=1e-4), (out, ref)

    print("KERNEL_OK")
</pallas_src>

<mosaic_0001>
module attributes {stable_mosaic.version = 11 : i64} {
  func.func @_fasttext_mlp_kernel(%arg0: i32, %arg1: memref<8x128xf32, #tpu.memory_space<vmem>>, %arg2: memref<128x128xf32, #tpu.memory_space<vmem>>, %arg3: memref<1x128xf32, #tpu.memory_space<vmem>>, %arg4: memref<128x128xf32, #tpu.memory_space<vmem>>, %arg5: memref<1x128xf32, #tpu.memory_space<vmem>>, %arg6: memref<8x128xf32, #tpu.memory_space<vmem>>) attributes {dimension_semantics = [#tpu.dimension_semantics<parallel>], iteration_bounds = array<i64: 1>, scalar_prefetch = 0 : i64, scratch_operands = 0 : i64, tpu.core_type = #tpu.core_type<tc>, window_params = [{transform_indices = @transform_0, window_bounds = array<i64: 8, 128>}, {pipeline_mode = #tpu.pipeline_mode<synchronous>, transform_indices = @transform_1, window_bounds = array<i64: 128, 128>}, {pipeline_mode = #tpu.pipeline_mode<synchronous>, transform_indices = @transform_2, window_bounds = array<i64: 1, 128>}, {pipeline_mode = #tpu.pipeline_mode<synchronous>, transform_indices = @transform_3, window_bounds = array<i64: 128, 128>}, {pipeline_mode = #tpu.pipeline_mode<synchronous>, transform_indices = @transform_4, window_bounds = array<i64: 1, 128>}, {transform_indices = @transform_5, window_bounds = array<i64: 8, 128>}]} {
    %c0 = arith.constant 0 : index
    %c0_0 = arith.constant 0 : index
    %0 = vector.load %arg1[%c0, %c0_0] : memref<8x128xf32, #tpu.memory_space<vmem>>, vector<8x128xf32>
    %c0_1 = arith.constant 0 : index
    %c0_2 = arith.constant 0 : index
    %1 = vector.load %arg2[%c0_1, %c0_2] : memref<128x128xf32, #tpu.memory_space<vmem>>, vector<128x128xf32>
    %cst = arith.constant dense<0.000000e+00> : vector<8x128xf32>
    %2 = tpu.matmul %0, %1, %cst {dimension_numbers = #tpu.dot_dimension_numbers<[1], [0], [0], [1], [0, 0, 1, 1], [], []>} : vector<8x128xf32>, vector<128x128xf32>, vector<8x128xf32> -> vector<8x128xf32>
    %c0_3 = arith.constant 0 : index
    %c0_4 = arith.constant 0 : index
    %3 = vector.load %arg3[%c0_3, %c0_4] : memref<1x128xf32, #tpu.memory_space<vmem>>, vector<1x128xf32>
    %4 = vector.broadcast %3 : vector<1x128xf32> to vector<8x128xf32>
    %5 = arith.addf %2, %4 : vector<8x128xf32>
    %cst_5 = arith.constant 0.000000e+00 : f32
    %6 = vector.broadcast %cst_5 : f32 to vector<8x128xf32>
    %7 = arith.maximumf %5, %6 : vector<8x128xf32>
    %c0_6 = arith.constant 0 : index
    %c0_7 = arith.constant 0 : index
    %8 = vector.load %arg4[%c0_6, %c0_7] : memref<128x128xf32, #tpu.memory_space<vmem>>, vector<128x128xf32>
    %cst_8 = arith.constant dense<0.000000e+00> : vector<8x128xf32>
    %9 = tpu.matmul %7, %8, %cst_8 {dimension_numbers = #tpu.dot_dimension_numbers<[1], [0], [0], [1], [0, 0, 1, 1], [], []>} : vector<8x128xf32>, vector<128x128xf32>, vector<8x128xf32> -> vector<8x128xf32>
    %c0_9 = arith.constant 0 : index
    %c0_10 = arith.constant 0 : index
    %10 = vector.load %arg5[%c0_9, %c0_10] : memref<1x128xf32, #tpu.memory_space<vmem>>, vector<1x128xf32>
    %11 = vector.broadcast %10 : vector<1x128xf32> to vector<8x128xf32>
    %12 = arith.addf %9, %11 : vector<8x128xf32>
    %c0_11 = arith.constant 0 : index
    %c0_12 = arith.constant 0 : index
    %13 = vector.load %arg6[%c0_11, %c0_12] : memref<8x128xf32, #tpu.memory_space<vmem>>, vector<8x128xf32>
    tpu.vector_store %arg6[%c0_11, %c0_12], %12 {strides = array<i32>} : memref<8x128xf32, #tpu.memory_space<vmem>>, vector<8x128xf32>,
    return
  }
  func.func @transform_0(%arg0: i32) -> (i32, i32) {
    %c0_i32 = arith.constant 0 : i32
    %c0_i32_0 = arith.constant 0 : i32
    return %arg0, %c0_i32 : i32, i32
  }
  func.func @transform_1(%arg0: i32) -> (i32, i32) {
    %c0_i32 = arith.constant 0 : i32
    %c0_i32_0 = arith.constant 0 : i32
    %c0_i32_1 = arith.constant 0 : i32
    return %c0_i32, %c0_i32_0 : i32, i32
  }
  func.func @transform_2(%arg0: i32) -> (i32, i32) {
    %c0_i32 = arith.constant 0 : i32
    %c0_i32_0 = arith.constant 0 : i32
    %c0_i32_1 = arith.constant 0 : i32
    return %c0_i32, %c0_i32_0 : i32, i32
  }
  func.func @transform_3(%arg0: i32) -> (i32, i32) {
    %c0_i32 = arith.constant 0 : i32
    %c0_i32_0 = arith.constant 0 : i32
    %c0_i32_1 = arith.constant 0 : i32
    return %c0_i32, %c0_i32_0 : i32, i32
  }
  func.func @transform_4(%arg0: i32) -> (i32, i32) {
    %c0_i32 = arith.constant 0 : i32
    %c0_i32_0 = arith.constant 0 : i32
    %c0_i32_1 = arith.constant 0 : i32
    return %c0_i32, %c0_i32_0 : i32, i32
  }
  func.func @transform_5(%arg0: i32) -> (i32, i32) {
    %c0_i32 = arith.constant 0 : i32
    %c0_i32_0 = arith.constant 0 : i32
    return %arg0, %c0_i32 : i32, i32
  }
}

</mosaic_0001>

<bundles_post_ra>
// kernel: fasttext_forward.1
= control target key start
LH: loop header
LB: loop body
LE: loop exit
PB: predicated region body
PF: predicated region fallthrough
CT: control target
= control target key end

     0   :  { %s247_s1 = inlined_call_operand.vmem [shape: f32[128,128], index: 1, kind: input, shape index: {}]   ;;  %s248_s3 = inlined_call_operand.vmem [shape: f32[128,128], index: 3, kind: input, shape index: {}]   ;;  %s249_s2 = inlined_call_operand.vmem [shape: f32[1,128], index: 2, kind: input, shape index: {}]   ;;  %s250_s0 = inlined_call_operand.vmem [shape: f32[8,128], index: 0, kind: input, shape index: {}]   ;;  %s251_s4 = inlined_call_operand.vmem [shape: f32[1,128], index: 4, kind: input, shape index: {}]   ;;  %s252_s5 = inlined_call_operand.vmem [shape: f32[8,128], index: 5, kind: output, shape index: {}]  }
   0x1   :  { %v36_v0 = vld [vmem:[%s247_s1 + $0x78] sm:$0xff]  ;;  %v35_v1 = vld [vmem:[%s247_s1 + $0x70] sm:$0xff]  ;;  %v34_v2 = vld [vmem:[%s247_s1 + $0x68] sm:$0xff] }
   0x2   :  { %41 = vmatpush.msra.mxu0 %v36_v0  ;;  %v33_v3 = vld [vmem:[%s247_s1 + $0x60] sm:$0xff]  ;;  %v77_v4 = vld [vmem:[%s248_s3 + $0x78] sm:$0xff]  ;;  %v76_v6 = vld [vmem:[%s248_s3 + $0x70] sm:$0xff] }
   0x3   :  { %v32_v5 = vld [vmem:[%s247_s1 + $0x58] sm:$0xff]  ;;  %82 = vmatpush.msra.mxu1 %v77_v4  ;;  %v75_v7 = vld [vmem:[%s248_s3 + $0x68] sm:$0xff]  ;;  %v31_v8 = vld [vmem:[%s247_s1 + $0x50] sm:$0xff] }
   0x4   :  { %42 = vmatpush.msra.mxu0 %v35_v1  ;;  %v74_v9 = vld [vmem:[%s248_s3 + $0x60] sm:$0xff]  ;;  %v30_v10 = vld [vmem:[%s247_s1 + $0x48] sm:$0xff]  ;;  %v73_v11 = vld [vmem:[%s248_s3 + $0x58] sm:$0xff] }
   0x5   :  { %83 = vmatpush.msra.mxu1 %v76_v6  ;;  %v29_v12 = vld [vmem:[%s247_s1 + $0x40] sm:$0xff]  ;;  %v72_v13 = vld [vmem:[%s248_s3 + $0x50] sm:$0xff]  ;;  %v28_v14 = vld [vmem:[%s247_s1 + $0x38] sm:$0xff] }
   0x6   :  { %43 = vmatpush.msra.mxu0 %v34_v2  ;;  %v71_v15 = vld [vmem:[%s248_s3 + $0x48] sm:$0xff]  ;;  %v27_v16 = vld [vmem:[%s247_s1 + $0x30] sm:$0xff]  ;;  %v70_v17 = vld [vmem:[%s248_s3 + $0x40] sm:$0xff] }
   0x7   :  { %84 = vmatpush.msra.mxu1 %v75_v7  ;;  %v26_v18 = vld [vmem:[%s247_s1 + $0x28] sm:$0xff]  ;;  %v69_v19 = vld [vmem:[%s248_s3 + $0x38] sm:$0xff]  ;;  %v25_v20 = vld [vmem:[%s247_s1 + $0x20] sm:$0xff] }
   0x8   :  { %44 = vmatpush.msra.mxu0 %v33_v3  ;;  %v68_v21 = vld [vmem:[%s248_s3 + $0x30] sm:$0xff]  ;;  %v24_v22 = vld [vmem:[%s247_s1 + $0x18] sm:$0xff]  ;;  %v67_v23 = vld [vmem:[%s248_s3 + $0x28] sm:$0xff] }
   0x9   :  { %85 = vmatpush.msra.mxu1 %v74_v9  ;;  %v23_v24 = vld [vmem:[%s247_s1 + $0x10] sm:$0xff]  ;;  %v66_v25 = vld [vmem:[%s248_s3 + $0x20] sm:$0xff]  ;;  %v22_v26 = vld [vmem:[%s247_s1 + $0x8] sm:$0xff] }
   0xa   :  { %45 = vmatpush.msra.mxu0 %v32_v5  ;;  %v65_v27 = vld [vmem:[%s248_s3 + $0x18] sm:$0xff]  ;;  %v21_v28 = vld [vmem:[%s247_s1] sm:$0xff]  ;;  %v64_v30 = vld [vmem:[%s248_s3 + $0x10] sm:$0xff] }
   0xb   :  { %86 = vmatpush.msra.mxu1 %v73_v11  ;;  %v20_v29 = vld [vmem:[%s250_s0] sm:$0xff]  ;;  %v63_v31 = vld [vmem:[%s248_s3 + $0x8] sm:$0xff] }
   0xc   :  { %46 = vmatpush.msra.mxu0 %v31_v8  ;;  %v62_v32 = vld [vmem:[%s248_s3] sm:$0xff] }
   0xd   :  { %87 = vmatpush.msra.mxu1 %v72_v13  ;;  %v107_v33 = vld [vmem:[%s249_s2] ss:$0 sm:$0xff] }
   0xe   :  { %47 = vmatpush.msra.mxu0 %v30_v10  ;;  %v108_v37 = vld [vmem:[%s251_s4] ss:$0 sm:$0xff] }
   0xf   :  { %88 = vmatpush.msra.mxu1 %v71_v15 }
  0x10   :  { %48 = vmatpush.msra.mxu0 %v29_v12 }
  0x11   :  { %89 = vmatpush.msra.mxu1 %v70_v17 }
  0x12   :  { %49 = vmatpush.msra.mxu0 %v28_v14 }
  0x13   :  { %90 = vmatpush.msra.mxu1 %v69_v19 }
  0x14   :  { %50 = vmatpush.msra.mxu0 %v27_v16 }
  0x15   :  { %91 = vmatpush.msra.mxu1 %v68_v21 }
  0x16   :  { %51 = vmatpush.msra.mxu0 %v26_v18 }
  0x17   :  { %92 = vmatpush.msra.mxu1 %v67_v23 }
  0x18   :  { %52 = vmatpush.msra.mxu0 %v25_v20 }
  0x19   :  { %93 = vmatpush.msra.mxu1 %v66_v25 }
  0x1a   :  { %53 = vmatpush.msra.mxu0 %v24_v22 }
  0x1b   :  { %94 = vmatpush.msra.mxu1 %v65_v27 }
  0x1c   :  { %54 = vmatpush.msra.mxu0 %v23_v24 }
  0x1d   :  { %95 = vmatpush.msra.mxu1 %v64_v30 }
  0x1e   :  { %55 = vmatpush.msra.mxu0 %v22_v26 }
  0x1f   :  { %96 = vmatpush.msra.mxu1 %v63_v31 }
  0x20   :  { %56 = vmatpush.msra.mxu0 %v21_v28 }
  0x21   :  { %57 = vmatmul.f32.vlgmr.msra.gmra.mxu0 %v20_v29  ;;  %97 = vmatpush.msra.mxu1 %v62_v32 }
  0x9e   :  { %v58_v34 = vpop.f32.mrf.mxu0 }
  0x9f   :  { %v59_v35 = vadd.f32 %v107_v33, %v58_v34 }
  0xa1   :  { %v61_v36 = vmax.f32 %v59_v35, 0.0 }
  0xa3   :  { %98 = vmatmul.f32.vlgmr.msra.gmra.mxu1 %v61_v36 }
 0x120   :  { %v99_v38 = vpop.f32.mrf.mxu1 }
 0x121   :  { %v100_v39 = vadd.f32 %v108_v37, %v99_v38 }
 0x123   :  { %102 = vst [vmem:[%s252_s5] sm:$0xff] %v100_v39 }

</bundles_post_ra>
